<compile_context>
chip_gen: v5e
topology: v5e:2x2
jax: 0.10.0
libtpu: 0.0.40
codegen_flags: <defaults>
</compile_context>

<pallas_src>
import functools

import jax
import jax.numpy as jnp
from jax.experimental import pallas as pl
from jax.experimental.pallas import tpu as pltpu

BN_EPS = 1e-5


# --------------------------------------------------------------------------------------
# In-kernel helpers
# --------------------------------------------------------------------------------------
def _conv_relu(h, w_mxu, b, left_edge, right_edge, *, split_taps):
    """Conv1d(k=3, replicate pad=1) + bias + ReLU in channel-major layout.

    h        : (Cin, N)  f32 activations, N = B*L on lanes
    w_mxu    : (Cout, 3*Cin) fused conv taps [left|center|right], already in MXU dtype
    b        : (Cout, 1) f32 bias (may already contain a folded BN shift)
    returns  : (Cout, N) f32  (post-ReLU, pre-BN)
    """
    cin, n = h.shape
    mxu_dtype = w_mxu.dtype

    # Shifted taps via XLU lane rolls; replicate padding at every sequence edge.
    # Rolls wrap across sequence boundaries, but every wrapped position is exactly a
    # left/right edge where the jnp.where overrides it with the edge value itself.
    h_left = jnp.where(left_edge, h, pltpu.roll(h, shift=1, axis=1))        # x[t-1]
    h_right = jnp.where(right_edge, h, pltpu.roll(h, shift=n - 1, axis=1))  # x[t+1]

    if split_taps:
        # Three accumulating K=Cin matmuls; avoids materializing the (3*Cin, N) concat.
        # Preferable on v7x (MRB accumulates in place); benchmark on v5e/v6e first.
        y = jnp.dot(w_mxu[:, :cin], h_left.astype(mxu_dtype),
                    preferred_element_type=jnp.float32)
        y += jnp.dot(w_mxu[:, cin:2 * cin], h.astype(mxu_dtype),
                     preferred_element_type=jnp.float32)
        y += jnp.dot(w_mxu[:, 2 * cin:], h_right.astype(mxu_dtype),
                     preferred_element_type=jnp.float32)
    else:
        # im2col: one K=3*Cin MXU push.  Concat in f32 (sublane offsets stay 8-aligned),
        # cast to the MXU dtype only at the matmul boundary.
        cols = jnp.concatenate([h_left, h, h_right], axis=0)                # (3*Cin, N)
        y = jnp.dot(w_mxu, cols.astype(mxu_dtype),
                    preferred_element_type=jnp.float32)

    return jnp.maximum(y + b, 0.0)


def _bn_scale_shift(y, gamma, beta):
    """Per-channel BN (training-mode, batch stats) expressed as an affine z = s*y + t.

    y           : (C, N) f32 post-ReLU activations
    gamma, beta : (C, 1) f32
    returns (scale, shift), each (C, 1) f32.
    """
    mean = jnp.mean(y, axis=1, keepdims=True)                               # (C, 1)
    mean_sq = jnp.mean(y * y, axis=1, keepdims=True)
    # Single-pass variance, clamped >= 0: E[y^2]-E[y]^2 can go slightly negative from
    # f32 cancellation, and rsqrt of a negative number would be NaN.
    var = jnp.maximum(mean_sq - mean * mean, 0.0)                           # biased var
    scale = gamma * jax.lax.rsqrt(var + BN_EPS)
    shift = beta - mean * scale
    # TODO(synk): BatchNorm running_mean/running_var momentum updates (and PyTorch's
    # unbiased running_var estimator) are training side effects not modelled here; only
    # the normalized forward output is produced.
    return scale, shift


def _fold_bn_into_conv(w, b, scale, shift, mxu_dtype):
    """Fold the previous stage's BN affine z = scale*y + shift into this conv.

    Because scale/shift are constant along N, im2col(scale*y + shift) =
    diag([scale]*3) @ im2col(y) + [shift]*3, so:
        W @ im2col(z) + b  ==  (W @ diag(scale3)) @ im2col(y) + (b + W @ shift3)
    The fold is O(Cout * 3Cin * 3Cin) weight-side work (tiny) and removes the per-element
    normalization pass.  Implemented with a diagonal matmul so no runtime transpose of
    the (Cin, 1) statistics is needed.

    w: (Cout, 3*Cin) f32   b: (Cout, 1) f32   scale/shift: (Cin, 1) f32
    returns (w_folded in mxu_dtype, b_folded f32)
    """
    k3 = w.shape[1]
    scale3 = jnp.concatenate([scale, scale, scale], axis=0)                 # (3*Cin, 1)
    shift3 = jnp.concatenate([shift, shift, shift], axis=0)                 # (3*Cin, 1)
    row = jax.lax.broadcasted_iota(jnp.int32, (k3, k3), 0)
    col = jax.lax.broadcasted_iota(jnp.int32, (k3, k3), 1)
    diag = jnp.where(row == col, scale3, 0.0)                               # diag(scale3)
    w_fold = jnp.dot(w, diag, preferred_element_type=jnp.float32)           # W * scale3^T
    b_fold = b + jnp.dot(w, shift3, preferred_element_type=jnp.float32)     # (Cout, 1)
    return w_fold.astype(mxu_dtype), b_fold


# --------------------------------------------------------------------------------------
# Kernel
# --------------------------------------------------------------------------------------
def linear_predictor_kernel(x_ref,
                            w1_ref, b1_ref, g1_ref, be1_ref,
                            w2_ref, b2_ref, g2_ref, be2_ref,
                            w3_ref, b3_ref, g3_ref, be3_ref,
                            wp_ref, bp_ref,
                            out_ref, *, seq_len, mxu_dtype, split_taps):
    # In-kernel transpose to channel-major: (N, D) -> (D, N).  This replaces the old
    # wrapper-side jnp.transpose (a full extra HBM read+write of x plus a launch).
    x = jnp.transpose(x_ref[...], (1, 0))                                   # (D, N) f32
    n = x.shape[1]

    # Per-sequence edge masks, computed once and reused by all three stages.
    lane = jax.lax.broadcasted_iota(jnp.int32, (1, n), 1)
    pos = lane % seq_len
    left_edge = pos == 0
    right_edge = pos == (seq_len - 1)

    # Stage 1: no incoming BN affine to fold; w1 is already in the MXU dtype.
    y1 = _conv_relu(x, w1_ref[...], b1_ref[...], left_edge, right_edge,
                    split_taps=split_taps)                                  # (D/2, N)
    s1, t1 = _bn_scale_shift(y1, g1_ref[...], be1_ref[...])

    # Stage 2: BN1 folded into conv2's weights/bias (no normalization pass over y1).
    w2f, b2f = _fold_bn_into_conv(w2_ref[...], b2_ref[...], s1, t1, mxu_dtype)
    y2 = _conv_relu(y1, w2f, b2f, left_edge, right_edge, split_taps=split_taps)
    s2, t2 = _bn_scale_shift(y2, g2_ref[...], be2_ref[...])

    # Stage 3: BN2 folded into conv3.
    w3f, b3f = _fold_bn_into_conv(w3_ref[...], b3_ref[...], s2, t2, mxu_dtype)
    y3 = _conv_relu(y2, w3f, b3f, left_edge, right_edge, split_taps=split_taps)
    s3, t3 = _bn_scale_shift(y3, g3_ref[...], be3_ref[...])                 # (D/8, 1)

    # Final Linear(D/8 -> 1) with BN3 folded in: lane-dense VPU broadcast-multiply +
    # sublane reduce (avoids a lane-sparse N=1 MXU matmul).  Output is a lane-dense
    # (1, B*L) slab.
    wp = wp_ref[...]                                                        # (D/8, 1)
    wp_fold = wp * s3                                                       # (D/8, 1)
    bias = bp_ref[0] + jnp.sum(wp * t3, axis=0, keepdims=True)              # (1, 1)
    out_ref[...] = jnp.sum(y3 * wp_fold, axis=0, keepdims=True) + bias      # (1, N)


# --------------------------------------------------------------------------------------
# Parameters / wrapper
# --------------------------------------------------------------------------------------
def _fuse_conv_weight(w_pt):
    """PyTorch Conv1d weight (Cout, Cin, K=3) -> fused (Cout, K*Cin), tap-major."""
    co, ci, k = w_pt.shape
    return jnp.transpose(w_pt, (0, 2, 1)).reshape(co, k * ci)


def make_params(d_model, key):
    """Deterministic synthetic parameters with PyTorch shapes, converted to the kernel's
    fused / channel-major layout (all f32)."""
    dims = [d_model, d_model // 2, d_model // 4, d_model // 8]
    params = []
    keys = jax.random.split(key, 3 * 4 + 2)
    ki = 0
    for layer in range(3):
        cin, cout = dims[layer], dims[layer + 1]
        w_pt = 0.1 * jax.random.normal(keys[ki], (cout, cin, 3), jnp.float32); ki += 1
        b = 0.1 * jax.random.normal(keys[ki], (cout, 1), jnp.float32); ki += 1
        g = 1.0 + 0.05 * jax.random.normal(keys[ki], (cout, 1), jnp.float32); ki += 1
        be = 0.05 * jax.random.normal(keys[ki], (cout, 1), jnp.float32); ki += 1
        params += [_fuse_conv_weight(w_pt), b, g, be]
    # PyTorch Linear weight is (1, d_model/8); stored as a (d_model/8, 1) column.
    wp = 0.1 * jax.random.normal(keys[ki], (dims[3], 1), jnp.float32); ki += 1
    bp = 0.1 * jax.random.normal(keys[ki], (1,), jnp.float32); ki += 1
    params += [wp, bp]
    return params


def _vmem_budget_bytes():
    """~75% of physical VMEM: ~48 MiB on v7x (64 MiB parts), ~96 MiB on v5e/v6e."""
    try:
        cap = int(pltpu.get_tpu_info().vmem_capacity_bytes)
    except Exception:
        cap = 64 << 20  # conservative (v7x-sized) fallback
    return (cap * 3) // 4


def linear_predictor(x, params, *, use_bf16_mxu=True, split_taps=False):
    """x: (B, L, d_model) -> (B, L) predictions.

    Matches PyTorch `.squeeze()` output for B>1 and L>1 (for B==1 or L==1 PyTorch would
    also drop that dimension).  use_bf16_mxu=True (default) feeds the MXU bf16 operands
    with f32 accumulation on all generations (v5e/v6e/v7x MXUs are bf16-native); expect
    small numeric deviations (~1e-2 relative) vs. exact-f32.  Pass use_bf16_mxu=False for
    f32 parity.  split_taps=True trades the im2col concat for three accumulating matmuls
    (recommended on v7x).
    """
    B, L, D = x.shape
    N = B * L
    x2d = x.reshape(N, D)  # free reshape; the channel-major transpose happens in-kernel

    mxu_dtype = jnp.bfloat16 if use_bf16_mxu else jnp.float32
    params = list(params)
    # Pre-cast the only statically-known MXU weight (stage 1).  Stage-2/3 weights are
    # rescaled at runtime by the BN fold, so they must stay f32 (cast at the MXU inside).
    params[0] = params[0].astype(mxu_dtype)

    vmem = pl.BlockSpec(memory_space=pltpu.MemorySpace.VMEM)
    smem = pl.BlockSpec(memory_space=pltpu.MemorySpace.SMEM)
    in_specs = [vmem] * 14 + [smem]  # x + 13 tensor params in VMEM; scalar bp in SMEM

    # Conservative single-block VMEM estimate: (N, D) input block (lane-padded to 128)
    # + transposed copy + taps/im2col/activations for all stages ~ (128 + 10*D) B/column.
    budget = _vmem_budget_bytes()
    est = int(N) * 4 * (128 + 10 * D) + (2 << 20)
    if est > budget:
        # TODO(synk): N-tiled two-pass BatchNorm path — grid over sequence-aligned N
        # tiles, per-channel sum/sumsq accumulators in VMEM scratch on an "arbitrary"
        # axis, then a second pass applying the folded weights.  Required to scale B*L
        # on v7x (64 MiB VMEM) and to use both v7x TensorCores ("parallel" N axis with a
        # cross-core stats reduction).  The BN coupling across all of N is why the
        # current design is single-block.
        raise NotImplementedError(
            f"B*L={N} needs ~{est >> 20} MiB of VMEM (> budget {budget >> 20} MiB); "
            "the N-tiled two-pass BN path is not implemented yet.")
    vmem_limit = int(min(budget, max(16 << 20, 2 * est)))

    kernel = functools.partial(linear_predictor_kernel,
                               seq_len=L, mxu_dtype=mxu_dtype, split_taps=split_taps)
    out = pl.pallas_call(
        kernel,
        out_shape=jax.ShapeDtypeStruct((1, N), jnp.float32),  # lane-dense output slab
        in_specs=in_specs,
        out_specs=vmem,
        compiler_params=pltpu.CompilerParams(vmem_limit_bytes=vmem_limit),
    )(x2d, *params)
    return out.reshape(B, L)


# --------------------------------------------------------------------------------------
# Pure-JAX reference (for correctness checking only; runs as plain XLA)
# --------------------------------------------------------------------------------------
def _reference_forward(x, params):
    (w1, b1, g1, be1, w2, b2, g2, be2, w3, b3, g3, be3, wp, bp) = params

    def stage(h, w2d, b, g, beta):
        hp = jnp.pad(h, ((0, 0), (1, 1), (0, 0)), mode="edge")
        cols = jnp.concatenate([hp[:, :-2], hp[:, 1:-1], hp[:, 2:]], axis=-1)
        y = jnp.einsum("blk,ok->blo", cols, w2d) + b[:, 0]
        y = jnp.maximum(y, 0.0)
        mean = jnp.mean(y, axis=(0, 1))
        var = jnp.var(y, axis=(0, 1))  # biased, matches BN training-mode forward
        return (y - mean) * jax.lax.rsqrt(var + BN_EPS) * g[:, 0] + beta[:, 0]

    h = stage(x, w1, b1, g1, be1)
    h = stage(h, w2, b2, g2, be2)
    h = stage(h, w3, b3, g3, be3)
    return jnp.einsum("blc,c->bl", h, wp[:, 0]) + bp[0]


if __name__ == "__main__":
    # B*L = 128 -> exactly one full lane width; small shapes consistent with the module.
    B, L, D = 8, 16, 32  # batch, sequence length, d_model
    key = jax.random.PRNGKey(0)
    kx, kp = jax.random.split(key)
    x = jax.random.normal(kx, (B, L, D), jnp.float32)
    params = make_params(D, kp)

    # Default production path: bf16 MXU operands, fused-tap single matmul.
    out = linear_predictor(x, params)
    jax.block_until_ready(out)
    assert out.shape == (B, L), out.shape
    assert bool(jnp.all(jnp.isfinite(out)))

    # f32 parity check against the pure-JAX reference, for both tap strategies.
    ref = _reference_forward(x, params)
    for split in (False, True):
        out_f32 = linear_predictor(x, params, use_bf16_mxu=False, split_taps=split)
        jax.block_until_ready(out_f32)
        err = float(jnp.max(jnp.abs(out_f32 - ref)))
        assert err < 5e-3, (split, err)

    print("KERNEL_OK")
</pallas_src>

<mosaic_0001>
module attributes {stable_mosaic.version = 11 : i64} {
  func.func @linear_predictor_kernel(%arg0: memref<128x32xf32, #tpu.memory_space<vmem>>, %arg1: memref<16x96xbf16, #tpu.memory_space<vmem>>, %arg2: memref<16x1xf32, #tpu.memory_space<vmem>>, %arg3: memref<16x1xf32, #tpu.memory_space<vmem>>, %arg4: memref<16x1xf32, #tpu.memory_space<vmem>>, %arg5: memref<8x48xf32, #tpu.memory_space<vmem>>, %arg6: memref<8x1xf32, #tpu.memory_space<vmem>>, %arg7: memref<8x1xf32, #tpu.memory_space<vmem>>, %arg8: memref<8x1xf32, #tpu.memory_space<vmem>>, %arg9: memref<4x24xf32, #tpu.memory_space<vmem>>, %arg10: memref<4x1xf32, #tpu.memory_space<vmem>>, %arg11: memref<4x1xf32, #tpu.memory_space<vmem>>, %arg12: memref<4x1xf32, #tpu.memory_space<vmem>>, %arg13: memref<4x1xf32, #tpu.memory_space<vmem>>, %arg14: memref<1xf32, #tpu.memory_space<smem>>, %arg15: memref<1x128xf32, #tpu.memory_space<vmem>>) attributes {dimension_semantics = [], scalar_prefetch = 0 : i64, scratch_operands = 0 : i64, tpu.core_type = #tpu.core_type<tc>} {
    %c0 = arith.constant 0 : index
    %c0_0 = arith.constant 0 : index
    %0 = vector.load %arg0[%c0, %c0_0] : memref<128x32xf32, #tpu.memory_space<vmem>>, vector<128x32xf32>
    %1 = tpu.transpose %0, [1, 0] : vector<128x32xf32> -> vector<32x128xf32>
    %2 = tpu.iota {dimensions = array<i32: 1>} : vector<1x128xi32>
    %c16_i32 = arith.constant 16 : i32
    %c0_i32 = arith.constant 0 : i32
    %3 = arith.cmpi eq, %c16_i32, %c0_i32 : i32
    %c1_i32 = arith.constant 1 : i32
    %4 = arith.select %3, %c1_i32, %c16_i32 : i32
    %5 = vector.broadcast %4 : i32 to vector<1x128xi32>
    %6 = arith.remsi %2, %5 : vector<1x128xi32>
    %c0_i32_1 = arith.constant 0 : i32
    %7 = vector.broadcast %c0_i32_1 : i32 to vector<1x128xi32>
    %8 = arith.cmpi ne, %6, %7 : vector<1x128xi32>
    %c0_i32_2 = arith.constant 0 : i32
    %9 = vector.broadcast %c0_i32_2 : i32 to vector<1x128xi32>
    %10 = arith.cmpi slt, %6, %9 : vector<1x128xi32>
    %c0_i32_3 = arith.constant 0 : i32
    %11 = arith.cmpi slt, %4, %c0_i32_3 : i32
    %12 = vector.broadcast %11 : i1 to vector<1x128xi1>
    %13 = vector.broadcast %12 : vector<1x128xi1> to vector<1x128xi1>
    %14 = arith.xori %10, %13 : vector<1x128xi1>
    %15 = arith.andi %14, %8 : vector<1x128xi1>
    %16 = vector.broadcast %4 : i32 to vector<1x128xi32>
    %17 = arith.addi %6, %16 : vector<1x128xi32>
    %18 = arith.select %15, %17, %6 : vector<1x128xi1>, vector<1x128xi32>
    %c0_i32_4 = arith.constant 0 : i32
    %19 = vector.broadcast %c0_i32_4 : i32 to vector<1x128xi32>
    %20 = arith.cmpi eq, %18, %19 : vector<1x128xi32>
    %c15_i32 = arith.constant 15 : i32
    %21 = vector.broadcast %c15_i32 : i32 to vector<1x128xi32>
    %22 = arith.cmpi eq, %18, %21 : vector<1x128xi32>
    %c0_5 = arith.constant 0 : index
    %c0_6 = arith.constant 0 : index
    %23 = vector.load %arg1[%c0_5, %c0_6] : memref<16x96xbf16, #tpu.memory_space<vmem>>, vector<16x96xbf16>
    %c0_7 = arith.constant 0 : index
    %c0_8 = arith.constant 0 : index
    %24 = vector.load %arg2[%c0_7, %c0_8] : memref<16x1xf32, #tpu.memory_space<vmem>>, vector<16x1xf32>
    %c1_i32_9 = arith.constant 1 : i32
    %25 = tpu.dynamic_rotate %1 by %c1_i32_9 dim 1 : vector<32x128xf32>, i32 -> vector<32x128xf32>
    %26 = vector.shape_cast %20 : vector<1x128xi1> to vector<1x128xi1>
    %27 = vector.broadcast %26 : vector<1x128xi1> to vector<32x128xi1>
    %28 = arith.select %27, %1, %25 : vector<32x128xi1>, vector<32x128xf32>
    %c127_i32 = arith.constant 127 : i32
    %29 = tpu.dynamic_rotate %1 by %c127_i32 dim 1 : vector<32x128xf32>, i32 -> vector<32x128xf32>
    %30 = vector.shape_cast %22 : vector<1x128xi1> to vector<1x128xi1>
    %31 = vector.broadcast %30 : vector<1x128xi1> to vector<32x128xi1>
    %32 = arith.select %31, %1, %29 : vector<32x128xi1>, vector<32x128xf32>
    %33 = tpu.concatenate %28, %1, %32 in 0 : vector<32x128xf32>, vector<32x128xf32>, vector<32x128xf32> -> vector<96x128xf32>
    %34 = arith.truncf %33 : vector<96x128xf32> to vector<96x128xbf16>
    %cst = arith.constant dense<0.000000e+00> : vector<16x128xf32>
    %35 = tpu.matmul %23, %34, %cst {dimension_numbers = #tpu.dot_dimension_numbers<[1], [0], [0], [1], [0, 0, 1, 1], [], []>} : vector<16x96xbf16>, vector<96x128xbf16>, vector<16x128xf32> -> vector<16x128xf32>
    %36 = vector.broadcast %24 : vector<16x1xf32> to vector<16x128xf32>
    %37 = arith.addf %35, %36 : vector<16x128xf32>
    %cst_10 = arith.constant 0.000000e+00 : f32
    %38 = vector.broadcast %cst_10 : f32 to vector<16x128xf32>
    %39 = arith.maximumf %37, %38 : vector<16x128xf32>
    %c0_11 = arith.constant 0 : index
    %c0_12 = arith.constant 0 : index
    %40 = vector.load %arg3[%c0_11, %c0_12] : memref<16x1xf32, #tpu.memory_space<vmem>>, vector<16x1xf32>
    %c0_13 = arith.constant 0 : index
    %c0_14 = arith.constant 0 : index
    %41 = vector.load %arg4[%c0_13, %c0_14] : memref<16x1xf32, #tpu.memory_space<vmem>>, vector<16x1xf32>
    %cst_15 = arith.constant dense<0.000000e+00> : vector<16xf32>
    %42 = vector.multi_reduction <add>, %39, %cst_15 [1] : vector<16x128xf32> to vector<16xf32>
    %43 = vector.shape_cast %42 : vector<16xf32> to vector<16x1xf32>
    %cst_16 = arith.constant 1.280000e+02 : f32
    %44 = vector.broadcast %cst_16 : f32 to vector<16x1xf32>
    %45 = arith.divf %43, %44 : vector<16x1xf32>
    %46 = arith.mulf %39, %39 : vector<16x128xf32>
    %cst_17 = arith.constant dense<0.000000e+00> : vector<16xf32>
    %47 = vector.multi_reduction <add>, %46, %cst_17 [1] : vector<16x128xf32> to vector<16xf32>
    %48 = vector.shape_cast %47 : vector<16xf32> to vector<16x1xf32>
    %cst_18 = arith.constant 1.280000e+02 : f32
    %49 = vector.broadcast %cst_18 : f32 to vector<16x1xf32>
    %50 = arith.divf %48, %49 : vector<16x1xf32>
    %51 = arith.mulf %45, %45 : vector<16x1xf32>
    %52 = arith.subf %50, %51 : vector<16x1xf32>
    %cst_19 = arith.constant 0.000000e+00 : f32
    %53 = vector.broadcast %cst_19 : f32 to vector<16x1xf32>
    %54 = arith.maximumf %52, %53 : vector<16x1xf32>
    %cst_20 = arith.constant 9.99999974E-6 : f32
    %55 = vector.broadcast %cst_20 : f32 to vector<16x1xf32>
    %56 = arith.addf %54, %55 : vector<16x1xf32>
    %57 = math.rsqrt %56 : vector<16x1xf32>
    %58 = arith.mulf %40, %57 : vector<16x1xf32>
    %59 = arith.mulf %45, %58 : vector<16x1xf32>
    %60 = arith.subf %41, %59 : vector<16x1xf32>
    %c0_21 = arith.constant 0 : index
    %c0_22 = arith.constant 0 : index
    %61 = vector.load %arg5[%c0_21, %c0_22] : memref<8x48xf32, #tpu.memory_space<vmem>>, vector<8x48xf32>
    %c0_23 = arith.constant 0 : index
    %c0_24 = arith.constant 0 : index
    %62 = vector.load %arg6[%c0_23, %c0_24] : memref<8x1xf32, #tpu.memory_space<vmem>>, vector<8x1xf32>
    %63 = tpu.concatenate %58, %58, %58 in 0 : vector<16x1xf32>, vector<16x1xf32>, vector<16x1xf32> -> vector<48x1xf32>
    %64 = tpu.concatenate %60, %60, %60 in 0 : vector<16x1xf32>, vector<16x1xf32>, vector<16x1xf32> -> vector<48x1xf32>
    %65 = tpu.iota {dimensions = array<i32: 0>} : vector<48x48xi32>
    %66 = tpu.iota {dimensions = array<i32: 1>} : vector<48x48xi32>
    %67 = arith.cmpi eq, %65, %66 : vector<48x48xi32>
    %cst_25 = arith.constant 0.000000e+00 : f32
    %68 = vector.shape_cast %63 : vector<48x1xf32> to vector<48x1xf32>
    %69 = vector.broadcast %68 : vector<48x1xf32> to vector<48x48xf32>
    %70 = vector.broadcast %cst_25 : f32 to vector<48x48xf32>
    %71 = arith.select %67, %69, %70 : vector<48x48xi1>, vector<48x48xf32>
    %cst_26 = arith.constant dense<0.000000e+00> : vector<8x48xf32>
    %72 = tpu.matmul %61, %71, %cst_26 {dimension_numbers = #tpu.dot_dimension_numbers<[1], [0], [0], [1], [0, 0, 1, 1], [], []>} : vector<8x48xf32>, vector<48x48xf32>, vector<8x48xf32> -> vector<8x48xf32>
    %cst_27 = arith.constant dense<0.000000e+00> : vector<8x1xf32>
    %73 = tpu.matmul %61, %64, %cst_27 {dimension_numbers = #tpu.dot_dimension_numbers<[1], [0], [0], [1], [0, 0, 1, 1], [], []>} : vector<8x48xf32>, vector<48x1xf32>, vector<8x1xf32> -> vector<8x1xf32>
    %74 = arith.addf %62, %73 : vector<8x1xf32>
    %75 = arith.truncf %72 : vector<8x48xf32> to vector<8x48xbf16>
    %c1_i32_28 = arith.constant 1 : i32
    %76 = tpu.dynamic_rotate %39 by %c1_i32_28 dim 1 : vector<16x128xf32>, i32 -> vector<16x128xf32>
    %77 = vector.shape_cast %20 : vector<1x128xi1> to vector<1x128xi1>
    %78 = vector.broadcast %77 : vector<1x128xi1> to vector<16x128xi1>
    %79 = arith.select %78, %39, %76 : vector<16x128xi1>, vector<16x128xf32>
    %c127_i32_29 = arith.constant 127 : i32
    %80 = tpu.dynamic_rotate %39 by %c127_i32_29 dim 1 : vector<16x128xf32>, i32 -> vector<16x128xf32>
    %81 = vector.shape_cast %22 : vector<1x128xi1> to vector<1x128xi1>
    %82 = vector.broadcast %81 : vector<1x128xi1> to vector<16x128xi1>
    %83 = arith.select %82, %39, %80 : vector<16x128xi1>, vector<16x128xf32>
    %84 = tpu.concatenate %79, %39, %83 in 0 : vector<16x128xf32>, vector<16x128xf32>, vector<16x128xf32> -> vector<48x128xf32>
    %85 = arith.truncf %84 : vector<48x128xf32> to vector<48x128xbf16>
    %cst_30 = arith.constant dense<0.000000e+00> : vector<8x128xf32>
    %86 = tpu.matmul %75, %85, %cst_30 {dimension_numbers = #tpu.dot_dimension_numbers<[1], [0], [0], [1], [0, 0, 1, 1], [], []>} : vector<8x48xbf16>, vector<48x128xbf16>, vector<8x128xf32> -> vector<8x128xf32>
    %87 = vector.broadcast %74 : vector<8x1xf32> to vector<8x128xf32>
    %88 = arith.addf %86, %87 : vector<8x128xf32>
    %cst_31 = arith.constant 0.000000e+00 : f32
    %89 = vector.broadcast %cst_31 : f32 to vector<8x128xf32>
    %90 = arith.maximumf %88, %89 : vector<8x128xf32>
    %c0_32 = arith.constant 0 : index
    %c0_33 = arith.constant 0 : index
    %91 = vector.load %arg7[%c0_32, %c0_33] : memref<8x1xf32, #tpu.memory_space<vmem>>, vector<8x1xf32>
    %c0_34 = arith.constant 0 : index
    %c0_35 = arith.constant 0 : index
    %92 = vector.load %arg8[%c0_34, %c0_35] : memref<8x1xf32, #tpu.memory_space<vmem>>, vector<8x1xf32>
    %cst_36 = arith.constant dense<0.000000e+00> : vector<8xf32>
    %93 = vector.multi_reduction <add>, %90, %cst_36 [1] : vector<8x128xf32> to vector<8xf32>
    %94 = vector.shape_cast %93 : vector<8xf32> to vector<8x1xf32>
    %cst_37 = arith.constant 1.280000e+02 : f32
    %95 = vector.broadcast %cst_37 : f32 to vector<8x1xf32>
    %96 = arith.divf %94, %95 : vector<8x1xf32>
    %97 = arith.mulf %90, %90 : vector<8x128xf32>
    %cst_38 = arith.constant dense<0.000000e+00> : vector<8xf32>
    %98 = vector.multi_reduction <add>, %97, %cst_38 [1] : vector<8x128xf32> to vector<8xf32>
    %99 = vector.shape_cast %98 : vector<8xf32> to vector<8x1xf32>
    %cst_39 = arith.constant 1.280000e+02 : f32
    %100 = vector.broadcast %cst_39 : f32 to vector<8x1xf32>
    %101 = arith.divf %99, %100 : vector<8x1xf32>
    %102 = arith.mulf %96, %96 : vector<8x1xf32>
    %103 = arith.subf %101, %102 : vector<8x1xf32>
    %cst_40 = arith.constant 0.000000e+00 : f32
    %104 = vector.broadcast %cst_40 : f32 to vector<8x1xf32>
    %105 = arith.maximumf %103, %104 : vector<8x1xf32>
    %cst_41 = arith.constant 9.99999974E-6 : f32
    %106 = vector.broadcast %cst_41 : f32 to vector<8x1xf32>
    %107 = arith.addf %105, %106 : vector<8x1xf32>
    %108 = math.rsqrt %107 : vector<8x1xf32>
    %109 = arith.mulf %91, %108 : vector<8x1xf32>
    %110 = arith.mulf %96, %109 : vector<8x1xf32>
    %111 = arith.subf %92, %110 : vector<8x1xf32>
    %c0_42 = arith.constant 0 : index
    %c0_43 = arith.constant 0 : index
    %112 = vector.load %arg9[%c0_42, %c0_43] : memref<4x24xf32, #tpu.memory_space<vmem>>, vector<4x24xf32>
    %c0_44 = arith.constant 0 : index
    %c0_45 = arith.constant 0 : index
    %113 = vector.load %arg10[%c0_44, %c0_45] : memref<4x1xf32, #tpu.memory_space<vmem>>, vector<4x1xf32>
    %114 = tpu.concatenate %109, %109, %109 in 0 : vector<8x1xf32>, vector<8x1xf32>, vector<8x1xf32> -> vector<24x1xf32>
    %115 = tpu.concatenate %111, %111, %111 in 0 : vector<8x1xf32>, vector<8x1xf32>, vector<8x1xf32> -> vector<24x1xf32>
    %116 = tpu.iota {dimensions = array<i32: 0>} : vector<24x24xi32>
    %117 = tpu.iota {dimensions = array<i32: 1>} : vector<24x24xi32>
    %118 = arith.cmpi eq, %116, %117 : vector<24x24xi32>
    %cst_46 = arith.constant 0.000000e+00 : f32
    %119 = vector.shape_cast %114 : vector<24x1xf32> to vector<24x1xf32>
    %120 = vector.broadcast %119 : vector<24x1xf32> to vector<24x24xf32>
    %121 = vector.broadcast %cst_46 : f32 to vector<24x24xf32>
    %122 = arith.select %118, %120, %121 : vector<24x24xi1>, vector<24x24xf32>
    %cst_47 = arith.constant dense<0.000000e+00> : vector<4x24xf32>
    %123 = tpu.matmul %112, %122, %cst_47 {dimension_numbers = #tpu.dot_dimension_numbers<[1], [0], [0], [1], [0, 0, 1, 1], [], []>} : vector<4x24xf32>, vector<24x24xf32>, vector<4x24xf32> -> vector<4x24xf32>
    %cst_48 = arith.constant dense<0.000000e+00> : vector<4x1xf32>
    %124 = tpu.matmul %112, %115, %cst_48 {dimension_numbers = #tpu.dot_dimension_numbers<[1], [0], [0], [1], [0, 0, 1, 1], [], []>} : vector<4x24xf32>, vector<24x1xf32>, vector<4x1xf32> -> vector<4x1xf32>
    %125 = arith.addf %113, %124 : vector<4x1xf32>
    %126 = arith.truncf %123 : vector<4x24xf32> to vector<4x24xbf16>
    %c1_i32_49 = arith.constant 1 : i32
    %127 = tpu.dynamic_rotate %90 by %c1_i32_49 dim 1 : vector<8x128xf32>, i32 -> vector<8x128xf32>
    %128 = vector.shape_cast %20 : vector<1x128xi1> to vector<1x128xi1>
    %129 = vector.broadcast %128 : vector<1x128xi1> to vector<8x128xi1>
    %130 = arith.select %129, %90, %127 : vector<8x128xi1>, vector<8x128xf32>
    %c127_i32_50 = arith.constant 127 : i32
    %131 = tpu.dynamic_rotate %90 by %c127_i32_50 dim 1 : vector<8x128xf32>, i32 -> vector<8x128xf32>
    %132 = vector.shape_cast %22 : vector<1x128xi1> to vector<1x128xi1>
    %133 = vector.broadcast %132 : vector<1x128xi1> to vector<8x128xi1>
    %134 = arith.select %133, %90, %131 : vector<8x128xi1>, vector<8x128xf32>
    %135 = tpu.concatenate %130, %90, %134 in 0 : vector<8x128xf32>, vector<8x128xf32>, vector<8x128xf32> -> vector<24x128xf32>
    %136 = arith.truncf %135 : vector<24x128xf32> to vector<24x128xbf16>
    %cst_51 = arith.constant dense<0.000000e+00> : vector<4x128xf32>
    %137 = tpu.matmul %126, %136, %cst_51 {dimension_numbers = #tpu.dot_dimension_numbers<[1], [0], [0], [1], [0, 0, 1, 1], [], []>} : vector<4x24xbf16>, vector<24x128xbf16>, vector<4x128xf32> -> vector<4x128xf32>
    %138 = vector.broadcast %125 : vector<4x1xf32> to vector<4x128xf32>
    %139 = arith.addf %137, %138 : vector<4x128xf32>
    %cst_52 = arith.constant 0.000000e+00 : f32
    %140 = vector.broadcast %cst_52 : f32 to vector<4x128xf32>
    %141 = arith.maximumf %139, %140 : vector<4x128xf32>
    %c0_53 = arith.constant 0 : index
    %c0_54 = arith.constant 0 : index
    %142 = vector.load %arg11[%c0_53, %c0_54] : memref<4x1xf32, #tpu.memory_space<vmem>>, vector<4x1xf32>
    %c0_55 = arith.constant 0 : index
    %c0_56 = arith.constant 0 : index
    %143 = vector.load %arg12[%c0_55, %c0_56] : memref<4x1xf32, #tpu.memory_space<vmem>>, vector<4x1xf32>
    %cst_57 = arith.constant dense<0.000000e+00> : vector<4xf32>
    %144 = vector.multi_reduction <add>, %141, %cst_57 [1] : vector<4x128xf32> to vector<4xf32>
    %145 = vector.shape_cast %144 : vector<4xf32> to vector<4x1xf32>
    %cst_58 = arith.constant 1.280000e+02 : f32
    %146 = vector.broadcast %cst_58 : f32 to vector<4x1xf32>
    %147 = arith.divf %145, %146 : vector<4x1xf32>
    %148 = arith.mulf %141, %141 : vector<4x128xf32>
    %cst_59 = arith.constant dense<0.000000e+00> : vector<4xf32>
    %149 = vector.multi_reduction <add>, %148, %cst_59 [1] : vector<4x128xf32> to vector<4xf32>
    %150 = vector.shape_cast %149 : vector<4xf32> to vector<4x1xf32>
    %cst_60 = arith.constant 1.280000e+02 : f32
    %151 = vector.broadcast %cst_60 : f32 to vector<4x1xf32>
    %152 = arith.divf %150, %151 : vector<4x1xf32>
    %153 = arith.mulf %147, %147 : vector<4x1xf32>
    %154 = arith.subf %152, %153 : vector<4x1xf32>
    %cst_61 = arith.constant 0.000000e+00 : f32
    %155 = vector.broadcast %cst_61 : f32 to vector<4x1xf32>
    %156 = arith.maximumf %154, %155 : vector<4x1xf32>
    %cst_62 = arith.constant 9.99999974E-6 : f32
    %157 = vector.broadcast %cst_62 : f32 to vector<4x1xf32>
    %158 = arith.addf %156, %157 : vector<4x1xf32>
    %159 = math.rsqrt %158 : vector<4x1xf32>
    %160 = arith.mulf %142, %159 : vector<4x1xf32>
    %161 = arith.mulf %147, %160 : vector<4x1xf32>
    %162 = arith.subf %143, %161 : vector<4x1xf32>
    %c0_63 = arith.constant 0 : index
    %c0_64 = arith.constant 0 : index
    %163 = vector.load %arg13[%c0_63, %c0_64] : memref<4x1xf32, #tpu.memory_space<vmem>>, vector<4x1xf32>
    %164 = arith.mulf %163, %160 : vector<4x1xf32>
    %c0_65 = arith.constant 0 : index
    %165 = memref.load %arg14[%c0_65] : memref<1xf32, #tpu.memory_space<smem>>
    %166 = arith.mulf %163, %162 : vector<4x1xf32>
    %cst_66 = arith.constant dense<0.000000e+00> : vector<1xf32>
    %167 = vector.multi_reduction <add>, %166, %cst_66 [0] : vector<4x1xf32> to vector<1xf32>
    %168 = vector.shape_cast %167 : vector<1xf32> to vector<1x1xf32>
    %169 = vector.broadcast %165 : f32 to vector<1x1xf32>
    %170 = arith.addf %169, %168 : vector<1x1xf32>
    %171 = vector.broadcast %164 : vector<4x1xf32> to vector<4x128xf32>
    %172 = arith.mulf %141, %171 : vector<4x128xf32>
    %cst_67 = arith.constant dense<0.000000e+00> : vector<128xf32>
    %173 = vector.multi_reduction <add>, %172, %cst_67 [0] : vector<4x128xf32> to vector<128xf32>
    %174 = vector.shape_cast %173 : vector<128xf32> to vector<1x128xf32>
    %175 = vector.broadcast %170 : vector<1x1xf32> to vector<1x128xf32>
    %176 = arith.addf %174, %175 : vector<1x128xf32>
    %c0_68 = arith.constant 0 : index
    %c0_69 = arith.constant 0 : index
    %177 = vector.load %arg15[%c0_68, %c0_69] : memref<1x128xf32, #tpu.memory_space<vmem>>, vector<1x128xf32>
    tpu.vector_store %arg15[%c0_68, %c0_69], %176 {strides = array<i32>} : memref<1x128xf32, #tpu.memory_space<vmem>>, vector<1x128xf32>,
    return
  }
}

</mosaic_0001>

<bundles_post_ra>
// kernel: tpu_custom_call.1
= control target key start
LH: loop header
LB: loop body
LE: loop exit
PB: predicated region body
PF: predicated region fallthrough
CT: control target
= control target key end

     0   :  { %s961_s0 = inlined_call_operand.vmem [shape: f32[128,32], index: 0, kind: input, shape index: {}]   ;;  %s962_s1 = inlined_call_operand.vmem [shape: bf16[16,96], index: 1, kind: input, shape index: {}]   ;;  %s963_s2 = inlined_call_operand.vmem [shape: f32[16,1], index: 2, kind: input, shape index: {}]   ;;  %s964_s3 = inlined_call_operand.vmem [shape: f32[16,1], index: 3, kind: input, shape index: {}]   ;;  %s965_s4 = inlined_call_operand.vmem [shape: f32[16,1], index: 4, kind: input, shape index: {}]   ;;  %s966_s5 = inlined_call_operand.vmem [shape: f32[8,48], index: 5, kind: input, shape index: {}]   ;;  %s967_s6 = inlined_call_operand.vmem [shape: f32[8,1], index: 6, kind: input, shape index: {}]   ;;  %s968_s7 = inlined_call_operand.vmem [shape: f32[8,1], index: 7, kind: input, shape index: {}]   ;;  %s969_s8 = inlined_call_operand.vmem [shape: f32[8,1], index: 8, kind: input, shape index: {}]   ;;  %s970_s9 = inlined_call_operand.vmem [shape: f32[4,24], index: 9, kind: input, shape index: {}]   ;;  %s971_s10 = inlined_call_operand.vmem [shape: f32[4,1], index: 10, kind: input, shape index: {}]   ;;  %s972_s11 = inlined_call_operand.vmem [shape: f32[4,1], index: 11, kind: input, shape index: {}]   ;;  %s973_s12 = inlined_call_operand.vmem [shape: f32[4,1], index: 12, kind: input, shape index: {}]   ;;  %s974_s13 = inlined_call_operand.vmem [shape: f32[4,1], index: 13, kind: input, shape index: {}]   ;;  %s975_s14 = inlined_call_operand.<no memory space> [shape: f32[1], index: 14, kind: input, shape index: {}]   ;;  %s976_s15 = inlined_call_operand.hbm [shape: f32[1,128], index: 15, kind: output, shape index: {}]  }
   0x1   :  { %v53_v0 = vld [vmem:[%s961_s0] sm:$0xff] }
   0x2   :  { %69 = vxpose.xlu0.b32.start [1/16] (narrow) %v53_v0, 32 }
   0x3   :  { %21 = vsyncpa [#allocation4], 0  ;;  %v54_v1 = vld [vmem:[%s961_s0 + $0x8] sm:$0xff]  ;;  %v55_v2 = vld [vmem:[%s961_s0 + $0x10] sm:$0xff]  ;;  %s652_s20 = smov 1   ;;  %s653_s21 = smov 127   ;;  %v101_v22 = vlaneseq }
   0x4   :  { %v56_v3 = vld [vmem:[%s961_s0 + $0x18] sm:$0xff]  ;;  %v57_v4 = vld [vmem:[%s961_s0 + $0x20] sm:$0xff]  ;;  %v58_v5 = vld [vmem:[%s961_s0 + $0x28] sm:$0xff]  ;;  %v654_v31 = vmov 0   ;;  %vm170_vm2 = vcmask 785408   ;;  %vm280_vm10 = vcmask 392192  }
   0x5   :  { %v59_v6 = vld [vmem:[%s961_s0 + $0x30] sm:$0xff]  ;;  %v60_v7 = vld [vmem:[%s961_s0 + $0x38] sm:$0xff]  ;;  %v61_v8 = vld [vmem:[%s961_s0 + $0x40] sm:$0xff]  ;;  %v790_v23 = vand.u32 127, %v101_v22  ;;  %603 = vset.pattern.permute.xlu1 %v654_v31  ;;  %604 = vset.pattern.permute.xlu2 %v654_v31  ;;  %s548_s28 = sshll.u32 %s976_s15, 4  ;;  %s549_s28 = int_to_ptr.hbm [resolvable:$true] %s548_s28 }
   0x6   :  { %v62_v9 = vld [vmem:[%s961_s0 + $0x48] sm:$0xff]  ;;  %v63_v10 = vld [vmem:[%s961_s0 + $0x50] sm:$0xff]  ;;  %v64_v11 = vld [vmem:[%s961_s0 + $0x58] sm:$0xff] }
   0x7   :  { %v65_v12 = vld [vmem:[%s961_s0 + $0x60] sm:$0xff]  ;;  %v66_v13 = vld [vmem:[%s961_s0 + $0x68] sm:$0xff]  ;;  %v67_v14 = vld [vmem:[%s961_s0 + $0x70] sm:$0xff]  ;;  %v107_v24 = vand.u32 15, %v790_v23 }
   0x8   :  { %v68_v15 = vld [vmem:[%s961_s0 + $0x78] sm:$0xff]  ;;  %v120_v29 = vld [vmem:[%s963_s2 + $0x8] sm:$0xff]  ;;  %v119_v30 = vld [vmem:[%s963_s2] sm:$0xff] }
   0x9   :  { %vm793_vm0 = vcmp.eq.s32.totalorder %v107_v24, 15  ;;  %vm811_vm1 = vcmp.eq.s32.totalorder %v107_v24, 0  ;;  %v577_v56 = vld [vmem:[%s962_s1] sm:$0xff] }
   0xa   :  { %70 = vxpose.xlu0.b32.cont [2/16] (narrow) %v54_v1, 32  ;;  %v389_v46 = vld [vmem:[%s970_s9] sm:$0xf] }
  0x12   :  { %71 = vxpose.xlu0.b32.cont [3/16] (narrow) %v55_v2, 32 }
  0x1a   :  { %72 = vxpose.xlu0.b32.cont [4/16] (narrow) %v56_v3, 32  ;;  %v655_v3 = vmov 128.0  }
  0x1b   :  { %616 = vrcp.f32 %v655_v3 }
  0x22   :  { %73 = vxpose.xlu0.b32.cont [5/16] (narrow) %v57_v4, 32  ;;  %v617_v4 = vpop.eup %616 }
  0x23   :  { %vm203_vm3 = vweird.f32 %v617_v4 }
  0x2a   :  { %74 = vxpose.xlu0.b32.cont [6/16] (narrow) %v58_v5, 32  ;;  %v199_v5 = vmul.f32 128.0, %v617_v4 }
  0x32   :  { %75 = vxpose.xlu0.b32.cont [7/16] (narrow) %v59_v6, 32  ;;  %v200_v6 = vsub.f32 1.0, %v199_v5 }
  0x3a   :  { %76 = vxpose.xlu0.b32.cont [8/16] (narrow) %v60_v7, 32  ;;  %v201_v7 = vmul.f32 %v617_v4, %v200_v6 }
  0x42   :  { %77 = vxpose.xlu0.b32.cont [9/16] (narrow) %v61_v8, 32 }
  0x4a   :  { %78 = vxpose.xlu0.b32.cont [10/16] (narrow) %v62_v9, 32  ;;  %v202_v9 = vadd.f32 %v617_v4, %v201_v7 }
  0x52   :  { %79 = vxpose.xlu0.b32.cont [11/16] (narrow) %v63_v10, 32  ;;  %v836_v10 = vsel %vm203_vm3, %v617_v4, %v202_v9 }
  0x5a   :  { %80 = vxpose.xlu0.b32.cont [12/16] (narrow) %v64_v11, 32 }
  0x62   :  { %81 = vxpose.xlu0.b32.cont [13/16] (narrow) %v65_v12, 32 }
  0x6a   :  { %82 = vxpose.xlu0.b32.cont [14/16] (narrow) %v66_v13, 32 }
  0x72   :  { %83 = vxpose.xlu0.b32.cont [15/16] (narrow) %v67_v14, 32 }
  0x7a   :  { %84 = vxpose.xlu0.b32.end [16/16] (narrow) %v68_v15, 32 }
  0xa6   :  { %v85_v16 = vpop.trf.xlu0 }
  0xae   :  { %v86_v17 = vpop.trf.xlu0 }
  0xaf   :  { %v598_v21 = vpack.i.bf16 %v86_v17, %v85_v16  ;;  %v151_v47 = vpack.c.bf16 %v86_v17, %v85_v16 }
  0xb6   :  { %v87_v18 = vpop.trf.xlu0 }
  0xbe   :  { %v88_v19 = vpop.trf.xlu0 }
  0xbf   :  { %v593_v20 = vpack.i.bf16 %v88_v19, %v87_v18  ;;  %v152_v42 = vpack.c.bf16 %v88_v19, %v87_v18 }
  0xc1   :  { %594 = vrot.lane.b32.xlu2 %v593_v20, %s652_s20  ;;  %584 = vrot.lane.b32.xlu1 %v593_v20, %s653_s21 }
  0xc9   :  { %599 = vrot.lane.b32.xlu2 %v598_v21, %s652_s20  ;;  %589 = vrot.lane.b32.xlu1 %v598_v21, %s653_s21 }
  0xd1   :  { %162 = vperm.xlu1 %603, %v120_v29   ;;  %157 = vperm.xlu2 %604, %v119_v30  }
  0xe1   :  { %615 = vset.pattern.permute.xlu0 %v654_v31 }
 0x11b   :  { %v595_v35 = vpop.permute.xlu2 %594 }
 0x11c   :  { %v597_v43 = vunpack.i.h.bf16 %v595_v35  ;;  %v596_v44 = vunpack.i.l.bf16 %v595_v35 }
 0x11e   :  { %v133_v50 = vsel %vm811_vm1, %v87_v18, %v596_v44  ;;  %v134_v51 = vsel %vm811_vm1, %v88_v19, %v597_v43  ;;  %v193_v43 = vld [vmem:[%s965_s4 + $0x8] sm:$0xff] }
 0x11f   :  { %v150_v52 = vpack.c.bf16 %v134_v51, %v133_v50  ;;  %v192_v51 = vld [vmem:[%s965_s4] sm:$0xff] }
 0x123   :  { %v600_v45 = vpop.permute.xlu2 %599 }
 0x124   :  { %v602_v48 = vunpack.i.h.bf16 %v600_v45  ;;  %v601_v49 = vunpack.i.l.bf16 %v600_v45  ;;  %v190_v45 = vld [vmem:[%s964_s3] sm:$0xff] }
 0x126   :  { %v131_v53 = vsel %vm811_vm1, %v85_v16, %v601_v49  ;;  %v132_v54 = vsel %vm811_vm1, %v86_v17, %v602_v48 }
 0x127   :  { %v149_v55 = vpack.c.bf16 %v132_v54, %v131_v53 }
 0x12b   :  { %v158_v57 = vpop.permute.xlu2 %157 }
 0x133   :  { %v585_v25 = vpop.permute.xlu1 %584 }
 0x134   :  { %v587_v27 = vunpack.i.h.bf16 %v585_v25  ;;  %v586_v28 = vunpack.i.l.bf16 %v585_v25 }
 0x136   :  { %v147_v32 = vsel %vm793_vm0, %v87_v18, %v586_v28  ;;  %v148_v33 = vsel %vm793_vm0, %v88_v19, %v587_v27 }
 0x137   :  { %v154_v34 = vpack.c.bf16 %v148_v33, %v147_v32 }
 0x139   :  { %176 = vmatpush.bf16.msra.mxu0 %v154_v34 }
 0x13b   :  { %v590_v36 = vpop.permute.xlu1 %589 }
 0x13c   :  { %v592_v37 = vunpack.i.h.bf16 %v590_v36  ;;  %v591_v38 = vunpack.i.l.bf16 %v590_v36 }
 0x13e   :  { %v145_v39 = vsel %vm793_vm0, %v85_v16, %v591_v38  ;;  %v146_v40 = vsel %vm793_vm0, %v86_v17, %v592_v37  ;;  %v191_v37 = vld [vmem:[%s964_s3 + $0x8] sm:$0xff] }
 0x13f   :  { %v153_v41 = vpack.c.bf16 %v146_v40, %v145_v39 }
 0x141   :  { %177 = vmatpush.bf16.msra.mxu0 %v153_v41 }
 0x143   :  { %v163_v61 = vpop.permute.xlu1 %162 }
 0x145   :  { %178 = vmatpush.bf16.msra.mxu0 %v152_v42 }
 0x149   :  { %179 = vmatpush.bf16.msra.mxu0 %v151_v47 }
 0x14d   :  { %180 = vmatpush.bf16.msra.mxu0 %v150_v52 }
 0x151   :  { %181 = vmatpush.bf16.msra.mxu0 %v149_v55  ;;  %v249_v55 = vld [vmem:[%s966_s5] sm:$0xff] }
 0x154   :  { %561 = vmatmul.msk.bf16.vlgmr.msra.gmra.mxu0 %vm170_vm2, %v577_v56  ;;  %v863_v56 = vshrl.u32 %v101_v22, 7 }
 0x156   :  { %v256_v3 = vadd.s32 32, %v863_v56  ;;  %v255_v4 = vadd.s32 24, %v863_v56  ;;  %v879_v5 = vadd.s32 16, %v863_v56  ;;  %v883_v7 = vadd.s32 8, %v863_v56 }
 0x157   :  { %vm258_vm2 = vcmp.eq.s32.totalorder %v863_v56, %v790_v23 }
 0x158   :  { %vm262_vm12 = vcmp.eq.s32.totalorder %v256_v3, %v790_v23  ;;  %vm261_vm13 = vcmp.eq.s32.totalorder %v255_v4, %v790_v23  ;;  %vm260_vm14 = vcmp.eq.s32.totalorder %v879_v5, %v790_v23  ;;  %vm259_vm15 = vcmp.eq.s32.totalorder %v883_v7, %v790_v23 }
 0x1d1   :  { %v183_v58 = vpop.f32.mrf.mxu0 }
 0x1d2   :  { %v184_v59 = vadd.f32 %v183_v58, %v158_v57  ;;  %v257_v57 = vadd.s32 40, %v863_v56 }
 0x1d4   :  { %v826_v60 = vmax.f32 %v184_v59, 0.0  ;;  %vm263_vm11 = vcmp.eq.s32.totalorder %v257_v57, %v790_v23 }
 0x1d6   :  { %194 = vadd.xlane.f32.xlu2 %v826_v60  ;;  %v207_v2 = vmul.f32 %v826_v60, %v826_v60 }
 0x1d9   :  { %v185_v62 = vpop.f32.mrf.mxu0 }
 0x1da   :  { %v186_v63 = vadd.f32 %v185_v62, %v163_v61 }
 0x1dc   :  { %v829_v0 = vmax.f32 %v186_v63, 0.0 }
 0x1de   :  { %196 = vadd.xlane.f32.xlu1 %v829_v0  ;;  %v208_v1 = vmul.f32 %v829_v0, %v829_v0  ;;  %v605_v52 = vpack.i.bf16 %v829_v0, %v826_v60  ;;  %v339_v22 = vpack.c.bf16 %v829_v0, %v826_v60 }
 0x1e0   :  { %211 = vadd.xlane.f32.xlu2 %v208_v1 }
 0x1e6   :  { %209 = vadd.xlane.f32.xlu1 %v207_v2 }
 0x249   :  { %v195_v8 = vpop.xlane.xlu2 %194 }
 0x24a   :  { %v205_v16 = vmul.f32 %v836_v10, %v195_v8 }
 0x24c   :  { %v215_v20 = vmul.f32 %v205_v16, %v205_v16 }
 0x251   :  { %v197_v11 = vpop.xlane.xlu1 %196 }
 0x252   :  { %v206_v12 = vmul.f32 %v836_v10, %v197_v11 }
 0x253   :  { %v212_v13 = vpop.xlane.xlu2 %211 }
 0x254   :  { %v216_v14 = vmul.f32 %v206_v12, %v206_v12  ;;  %v214_v15 = vmul.f32 %v212_v13, %v836_v10 }
 0x256   :  { %v218_v17 = vsub.f32 %v214_v15, %v216_v14  ;;  %v250_v15 = vld [vmem:[%s967_s6] sm:$0xff] }
 0x258   :  { %v220_v18 = vmax.f32 %v218_v17, 0.0 }
 0x259   :  { %v210_v19 = vpop.xlane.xlu1 %209 }
 0x25a   :  { %v222_v21 = vadd.f32 1e-05, %v220_v18  ;;  %v213_v24 = vmul.f32 %v210_v19, %v836_v10 }
 0x25c   :  { %618 = vrsqrt.f32 %v222_v21  ;;  %v217_v25 = vsub.f32 %v213_v24, %v215_v20  ;;  %vm239_vm5 = vweird.f32 %v222_v21 }
 0x25e   :  { %v219_v27 = vmax.f32 %v217_v25, 0.0 }
 0x260   :  { %v221_v28 = vadd.f32 1e-05, %v219_v27 }
 0x262   :  { %v619_v29 = vpop.eup %618  ;;  %620 = vrsqrt.f32 %v221_v28  ;;  %vm229_vm8 = vweird.f32 %v221_v28 }
 0x263   :  { %v234_v30 = vmul.f32 %v619_v29, %v222_v21  ;;  %vm240_vm4 = vweird.f32 %v619_v29 }
 0x264   :  { %vm241_vm6 = vmor %vm239_vm5, %vm240_vm4  ;;  %vm461_vm4 = vcmask 1043456  }
 0x265   :  { %v235_v31 = vmul.f32 %v619_v29, %v234_v30 }
 0x267   :  { %v236_v32 = vmul.f32 0.5, %v235_v31 }
 0x268   :  { %v621_v33 = vpop.eup %620 }
 0x269   :  { %v237_v34 = vsub.f32 1.5, %v236_v32  ;;  %v224_v35 = vmul.f32 %v621_v33, %v221_v28  ;;  %vm230_vm7 = vweird.f32 %v621_v33 }
 0x26a   :  { %vm231_vm9 = vmor %vm229_vm8, %vm230_vm7 }
 0x26b   :  { %v225_v36 = vmul.f32 %v621_v33, %v224_v35  ;;  %v238_v38 = vmul.f32 %v619_v29, %v237_v34 }
 0x26d   :  { %v226_v39 = vmul.f32 0.5, %v225_v36  ;;  %v242_v40 = vsel %vm241_vm6, %v619_v29, %v238_v38 }
 0x26e   :  { %v244_v41 = vmul.f32 %v242_v40, %v191_v37 }
 0x26f   :  { %v227_v42 = vsub.f32 1.5, %v226_v39 }
 0x270   :  { %271 = vperm.xlu2 %604, %v244_v41   ;;  %v246_v44 = vmul.f32 %v244_v41, %v206_v12 }
 0x271   :  { %v228_v47 = vmul.f32 %v621_v33, %v227_v42 }
 0x272   :  { %v248_v48 = vsub.f32 %v193_v43, %v246_v44  ;;  %v363_v44 = vld [vmem:[%s968_s7] sm:$0xff] }
 0x273   :  { %v232_v49 = vsel %vm231_vm9, %v621_v33, %v228_v47  ;;  %vm511_vm9 = vcmask 3072  }
 0x274   :  { %314 = vmatpush.msra.mxu2 %v248_v48  ;;  %v243_v50 = vmul.f32 %v232_v49, %v190_v45 }
 0x276   :  { %266 = vperm.xlu1 %603, %v243_v50   ;;  %v245_v53 = vmul.f32 %v243_v50, %v205_v16 }
 0x278   :  { %606 = vrot.lane.b32.xlu2 %v605_v52, %s653_s21  ;;  %v247_v54 = vsub.f32 %v192_v51, %v245_v53  ;;  %v364_v53 = vld [vmem:[%s969_s8] sm:$0xff] }
 0x27a   :  { %315 = vmatpush.msra.mxu2 %v247_v54 }
 0x27c   :  { %316 = vmatpush.msra.mxu2 %v248_v48 }
 0x27e   :  { %611 = vrot.lane.b32.xlu1 %v605_v52, %s652_s20  ;;  %317 = vmatpush.msra.mxu2 %v247_v54 }
 0x280   :  { %318 = vmatpush.msra.mxu2 %v248_v48 }
 0x282   :  { %319 = vmatpush.msra.mxu2 %v247_v54 }
 0x283   :  { %569 = vmatmul.msk.f32.vlgmr.msra.gmra.mxu2 %vm280_vm10, %v249_v55 }
 0x2ca   :  { %v272_v58 = vpop.permute.xlu2 %271 }
 0x2cb   :  { %562 = vmatpush.msk.msra.mxu1 %vm263_vm11, %v272_v58 }
 0x2d2   :  { %v607_v59 = vpop.permute.xlu2 %606 }
 0x2d3   :  { %v609_v61 = vunpack.i.h.bf16 %v607_v59  ;;  %v608_v62 = vunpack.i.l.bf16 %v607_v59 }
 0x2d5   :  { %v336_v63 = vsel %vm793_vm0, %v826_v60, %v608_v62  ;;  %v337_v1 = vsel %vm793_vm0, %v829_v0, %v609_v61 }
 0x2d6   :  { %v340_v2 = vpack.c.bf16 %v337_v1, %v336_v63 }
 0x2d8   :  { %354 = vmatpush.bf16.msra.mxu3 %v340_v2 }
 0x2dc   :  { %355 = vmatpush.bf16.msra.mxu3 %v339_v22 }
 0x2e8   :  { %v267_v6 = vpop.permute.xlu1 %266 }
 0x2e9   :  { %563 = vmatpush.msk.msra.mxu1 %vm262_vm12, %v267_v6 }
 0x2eb   :  { %564 = vmatpush.msk.msra.mxu1 %vm261_vm13, %v272_v58 }
 0x2ed   :  { %565 = vmatpush.msk.msra.mxu1 %vm260_vm14, %v267_v6 }
 0x2ef   :  { %566 = vmatpush.msk.msra.mxu1 %vm259_vm15, %v272_v58  ;;  %v390_v58 = vld [vmem:[%s971_s10] sm:$0xf] }
 0x2f0   :  { %v612_v8 = vpop.permute.xlu1 %611 }
 0x2f1   :  { %v614_v9 = vunpack.i.h.bf16 %v612_v8  ;;  %v613_v11 = vunpack.i.l.bf16 %v612_v8  ;;  %567 = vmatpush.msk.msra.mxu1 %vm258_vm2, %v267_v6 }
 0x2f2   :  { %568 = vmatmul.msk.f32.vlgmr.msra.gmra.mxu1 %vm280_vm10, %v249_v55 }
 0x2f3   :  { %v330_v12 = vsel %vm811_vm1, %v826_v60, %v613_v11  ;;  %v331_v13 = vsel %vm811_vm1, %v829_v0, %v614_v9 }
 0x2f4   :  { %v338_v14 = vpack.c.bf16 %v331_v13, %v330_v12 }
 0x2f6   :  { %356 = vmatpush.bf16.msra.mxu3 %v338_v14 }
 0x306   :  { %v321_v16 = vpop.f32.mrf.mxu2 }
 0x307   :  { %v324_v17 = vadd.f32 %v321_v16, %v250_v15 }
 0x309   :  { %343 = vperm.xlu2 %604, %v324_v17  }
 0x363   :  { %v344_v20 = vpop.permute.xlu2 %343 }
 0x36f   :  { %v301_v18 = vpop.f32.mrf.mxu1 }
 0x370   :  { %v325_v19 = vpack.c.bf16 %v301_v18, %v301_v18  ;;  %v479_v18 = vld [vmem:[%s972_s11] sm:$0xf] }
 0x372   :  { %570 = vmatmul.msk.bf16.vlgmr.msra.gmra.mxu3 %vm280_vm10, %v325_v19 }
 0x3f5   :  { %v358_v21 = vpop.f32.mrf.mxu3 }
 0x3f6   :  { %v359_v60 = vadd.f32 %v358_v21, %v344_v20 }
 0x3f8   :  { %v362_v24 = vmax.f32 %v359_v60, 0.0  ;;  %v480_v60 = vld [vmem:[%s973_s12] sm:$0xf]  ;;  %s656_s12 = smov [#allocation3]  }
 0x3fa   :  { %365 = vadd.xlane.f32.xlu1 %v362_v24  ;;  %v368_v25 = vmul.f32 %v362_v24, %v362_v24 }
 0x3fc   :  { %369 = vadd.xlane.f32.xlu2 %v368_v25 }
 0x3fd   :  { %v360_v0 = vpop.f32.mrf.mxu3 }
 0x413   :  { %448 = vrot.lane.b32.xlu1 %v362_v24, %s653_s21 }
 0x414   :  { %445 = vrot.lane.b32.xlu2 %v362_v24, %s652_s20 }
 0x46d   :  { %v366_v27 = vpop.xlane.xlu1 %365 }
 0x46e   :  { %v367_v28 = vmul.f32 %v366_v27, %v836_v10 }
 0x46f   :  { %v370_v29 = vpop.xlane.xlu2 %369 }
 0x470   :  { %v372_v30 = vmul.f32 %v367_v28, %v367_v28  ;;  %v371_v31 = vmul.f32 %v370_v29, %v836_v10 }
 0x472   :  { %v373_v32 = vsub.f32 %v371_v31, %v372_v30 }
 0x474   :  { %v374_v33 = vmax.f32 %v373_v32, 0.0 }
 0x476   :  { %v375_v34 = vadd.f32 1e-05, %v374_v33 }
 0x477   :  { %v446_v41 = vpop.permute.xlu2 %445 }
 0x478   :  { %622 = vrsqrt.f32 %v375_v34  ;;  %vm382_vm5 = vweird.f32 %v375_v34  ;;  %v447_v47 = vsel %vm811_vm1, %v362_v24, %v446_v41 }
 0x479   :  { %v451_v51 = vpack.c.bf16 %v362_v24, %v447_v47 }
 0x47e   :  { %v623_v35 = vpop.eup %622 }
 0x47f   :  { %v377_v36 = vmul.f32 %v623_v35, %v375_v34  ;;  %vm383_vm3 = vweird.f32 %v623_v35  ;;  %v519_v34 = vstv %s975_s14 }
 0x480   :  { %vm384_vm6 = vmor %vm382_vm5, %vm383_vm3 }
 0x481   :  { %v378_v37 = vmul.f32 %v623_v35, %v377_v36 }
 0x483   :  { %v379_v38 = vmul.f32 0.5, %v378_v37 }
 0x485   :  { %v380_v39 = vsub.f32 1.5, %v379_v38  ;;  %v449_v40 = vpop.permute.xlu1 %448 }
 0x486   :  { %v450_v42 = vsel %vm793_vm0, %v362_v24, %v449_v40  ;;  %vm399_vm0 = vcmask 195584  }
 0x487   :  { %v452_v43 = vpack.c.bf16 %v450_v42, %v450_v42  ;;  %v381_v45 = vmul.f32 %v623_v35, %v380_v39 }
 0x489   :  { %v463_v48 = vsel %vm461_vm4, %v452_v43, 0  ;;  %v385_v49 = vsel %vm384_vm6, %v623_v35, %v381_v45 }
 0x48a   :  { %471 = vmatpush.bf16.msrb.mxu1 %v463_v48  ;;  %v386_v50 = vmul.f32 %v385_v49, %v363_v44 }
 0x48c   :  { %393 = vperm.xlu0 %615, %v386_v50   ;;  %v387_v26 = vmul.f32 %v386_v50, %v367_v28 }
 0x48e   :  { %472 = vmatpush.bf16.msrb.mxu1 %v451_v51  ;;  %v388_v54 = vsub.f32 %v364_v53, %v387_v26 }
 0x4fe   :  { %v394_v52 = vpop.permute.xlu0 %393 }
 0x4ff   :  { %571 = vmatpush.msk.msrb.mxu2 %vm260_vm14, %v394_v52 }
 0x501   :  { %572 = vmatpush.msk.msrb.mxu2 %vm259_vm15, %v394_v52 }
 0x503   :  { %573 = vmatpush.msk.msrb.mxu2 %vm258_vm2, %v394_v52 }
 0x504   :  { %574 = vmatmul.msk.f32.vlgmr.msrb.gmra.mxu2 %vm399_vm0, %v389_v46 }
 0x505   :  { %436 = vmatpush.msra.mxu2 %v388_v54 }
 0x507   :  { %437 = vmatpush.msra.mxu2 %v388_v54 }
 0x509   :  { %438 = vmatpush.msra.mxu2 %v388_v54 }
 0x50c   :  { %575 = vmatmul.msk.f32.vlgmr.msra.gmra.mxu2 %vm399_vm0, %v389_v46 }
 0x587   :  { %v420_v55 = vpop.f32.mrf.mxu2 }
 0x588   :  { %v444_v57 = vpack.c.bf16 %v420_v55, %v420_v55 }
 0x58a   :  { %576 = vmatmul.msk.bf16.vlgmr.msrb.gmra.mxu1 %vm399_vm0, %v444_v57 }
 0x58f   :  { %v440_v59 = vpop.f32.mrf.mxu2 }
 0x590   :  { %v443_v61 = vadd.f32 %v440_v59, %v390_v58 }
 0x592   :  { %455 = vperm.xlu1 %603, %v443_v61  }
 0x604   :  { %v456_v62 = vpop.permute.xlu1 %455 }
 0x607   :  { %v474_v63 = vpop.f32.mrf.mxu1 }
 0x608   :  { %v475_v23 = vadd.f32 %v474_v63, %v456_v62 }
 0x60a   :  { %v478_v56 = vmax.f32 %v475_v23, 0.0 }
 0x60c   :  { %v481_v1 = vsel %vm461_vm4, %v478_v56, 0.0  ;;  %v485_v2 = vmul.f32 %v478_v56, %v478_v56 }
 0x60d   :  { %482 = vadd.xlane.f32.xlu2 %v481_v1 }
 0x60e   :  { %v486_v22 = vsel %vm461_vm4, %v485_v2, 0.0 }
 0x60f   :  { %v476_v3 = vpop.f32.mrf.mxu1  ;;  %487 = vadd.xlane.f32.xlu1 %v486_v22 }
 0x680   :  { %v483_v4 = vpop.xlane.xlu2 %482 }
 0x681   :  { %v484_v5 = vmul.f32 %v483_v4, %v836_v10 }
 0x682   :  { %v488_v6 = vpop.xlane.xlu1 %487 }
 0x683   :  { %v490_v7 = vmul.f32 %v484_v5, %v484_v5  ;;  %v489_v8 = vmul.f32 %v488_v6, %v836_v10  ;;  %v507_v10 = vld [vmem:[%s974_s13] sm:$0xf]  ;;  %s546_s13 = sshll.u32 %s656_s12, 4  ;;  %s547_s13 = int_to_ptr.vmem [resolvable:$true] %s546_s13 }
 0x685   :  { %v491_v9 = vsub.f32 %v489_v8, %v490_v7 }
 0x687   :  { %v492_v11 = vmax.f32 %v491_v9, 0.0 }
 0x689   :  { %v493_v12 = vadd.f32 1e-05, %v492_v11 }
 0x68b   :  { %624 = vrsqrt.f32 %v493_v12  ;;  %vm500_vm7 = vweird.f32 %v493_v12 }
 0x691   :  { %v625_v13 = vpop.eup %624 }
 0x692   :  { %v495_v14 = vmul.f32 %v625_v13, %v493_v12  ;;  %vm501_vm1 = vweird.f32 %v625_v13 }
 0x693   :  { %vm502_vm8 = vmor %vm500_vm7, %vm501_vm1 }
 0x694   :  { %v496_v15 = vmul.f32 %v625_v13, %v495_v14 }
 0x696   :  { %v497_v16 = vmul.f32 0.5, %v496_v15 }
 0x698   :  { %v498_v17 = vsub.f32 1.5, %v497_v16 }
 0x69a   :  { %v499_v19 = vmul.f32 %v625_v13, %v498_v17 }
 0x69c   :  { %v503_v20 = vsel %vm502_vm8, %v625_v13, %v499_v19 }
 0x69d   :  { %v504_v21 = vmul.f32 %v503_v20, %v479_v18 }
 0x69f   :  { %v508_v24 = vmul.f32 %v507_v10, %v504_v21  ;;  %v505_v25 = vmul.f32 %v504_v21, %v484_v5 }
 0x6a1   :  { %523 = vperm.xlu2 %604, %v508_v24   ;;  %v506_v0 = vsub.f32 %v480_v60, %v505_v25 }
 0x6a3   :  { %v510_v27 = vmul.f32 %v507_v10, %v506_v0 }
 0x6a5   :  { %v512_v28 = vsel %vm511_vm9, %v510_v27, 0.0 }
 0x6a6   :  { %v513_v29 = vrot.slane %v512_v28, 4 }
 0x6a8   :  { %v514_v30 = vadd.f32 %v513_v29, %v512_v28 }
 0x6aa   :  { %v515_v31 = vrot.slane %v514_v30, 2 }
 0x6ac   :  { %v516_v32 = vadd.f32 %v515_v31, %v514_v30 }
 0x6ae   :  { %v517_v33 = vrot.slane %v516_v32, 1 }
 0x6b0   :  { %v518_v35 = vadd.f32 %v517_v33, %v516_v32 }
 0x6b2   :  { %v520_v36 = vadd.f32 %v519_v34, %v518_v35 }
 0x6b4   :  { %536 = vperm.xlu1 %603, %v520_v36  }
 0x6fb   :  { %v524_v37 = vpop.permute.xlu2 %523 }
 0x6fc   :  { %v526_v38 = vmul.f32 %v524_v37, %v478_v56 }
 0x6fe   :  { %v527_v39 = vsel %vm461_vm4, %v526_v38, 0.0 }
 0x6ff   :  { %v528_v40 = vrot.slane %v527_v39, 4 }
 0x701   :  { %v529_v41 = vadd.f32 %v528_v40, %v527_v39 }
 0x703   :  { %v530_v42 = vrot.slane %v529_v41, 2 }
 0x705   :  { %v531_v43 = vadd.f32 %v530_v42, %v529_v41 }
 0x707   :  { %v532_v44 = vrot.slane %v531_v43, 1 }
 0x709   :  { %v533_v45 = vadd.f32 %v532_v44, %v531_v43 }
 0x726   :  { %v537_v47 = vpop.permute.xlu1 %536 }
 0x727   :  { %v539_v48 = vadd.f32 %v537_v47, %v533_v45 }
 0x729   :  { %540 = vst [vmem:[#allocation3] sm:$0x1] %v539_v48 }
 0x72a   :  { %551 = dma.vmem_to_hbm [thread:$0]  %s547_s13, 16, %s549_s28, [#allocation4]  }
 0x72b   :  { %650 = dma.done.wait [#allocation4], 16  }
 0x72c   :  { %651 = vsyncadd [#allocation4], 4294967280 }
 0x72d   :  { %556 = vsyncpa [#allocation4], 1 }

</bundles_post_ra>
